<compile_context>
chip_gen: v7x
topology: tpu7x:2x2x1
jax: 0.10.0
libtpu: 0.0.40
codegen_flags: <defaults>
</compile_context>

<pallas_src>
import functools

import jax
import jax.numpy as jnp
from jax.experimental import pallas as pl
from jax.experimental.pallas import tpu as pltpu


def _round_up(v, k):
    return (v + k - 1) // k * k


def _mlp_kernel(x_ref, w1_ref, b1_ref, w2_ref, b2_ref, o_ref, *, compute_dtype):
    # x_ref : (TM, F)   activation tile (input dtype; cast on the VPU below)
    # w1_ref: (F, H)    b1_ref: (1, H) f32
    # w2_ref: (H, O)    b2_ref: (1, O) f32
    # o_ref : (TM, O)   x.dtype
    x = x_ref[...].astype(compute_dtype)
    w1 = w1_ref[...].astype(compute_dtype)
    h = jnp.dot(x, w1, preferred_element_type=jnp.float32)
    h = jnp.maximum(h + b1_ref[...], 0.0)               # bias + ReLU in f32
    # TODO(synk): chunk H here (fori_loop over H-slices of w1/w2 + (TM, O) accumulator)
    # once the (TM, H) f32 intermediate no longer fits comfortably in vregs/VMEM.
    w2 = w2_ref[...].astype(compute_dtype)
    y = jnp.dot(h.astype(compute_dtype), w2, preferred_element_type=jnp.float32)
    o_ref[...] = (y + b2_ref[...]).astype(o_ref.dtype)


def _vmem_bytes(tm, f, h, o, x_dtype, w_dtype, out_dtype):
    """Rough per-step VMEM footprint, accounting for (8, 128) tile padding."""
    lane = lambda d: _round_up(max(d, 1), 128)
    sub = lambda d: _round_up(max(d, 1), 8)
    x_b = 2 * sub(tm) * lane(f) * jnp.dtype(x_dtype).itemsize       # double-buffered x tiles
    o_b = 2 * sub(tm) * lane(o) * jnp.dtype(out_dtype).itemsize     # double-buffered out tiles
    w_b = 2 * (sub(f) * lane(h) + sub(h) * lane(o)) * jnp.dtype(w_dtype).itemsize
    bias_b = 2 * (sub(1) * lane(h) + sub(1) * lane(o)) * 4
    hidden_b = sub(tm) * lane(h) * 4                                # f32 (TM, H) intermediate
    return x_b + o_b + w_b + bias_b + hidden_b


def mlp_forward(x, w1, b1, w2, b2, *, tile_m=1024, compute_dtype=None,
                vmem_budget_bytes=36 * 1024 * 1024):
    """x: (B, N, F). w1: (F, H), b1: (H,) or (1, H), w2: (H, O), b2: (O,) or (1, O).

    Returns (B, N, O) in x.dtype. Computes relu(x @ w1 + b1) @ w2 + b2.
    """
    b, n, f = x.shape
    h_dim, o_dim = w1.shape[1], w2.shape[1]
    m = b * n
    if compute_dtype is None:
        compute_dtype = x.dtype          # default: match the module's f32 semantics

    x2d = x.reshape(m, f)                # free (contiguous) reshape; no pad, no cast
    b1_2d = jnp.asarray(b1, jnp.float32).reshape(1, h_dim)
    b2_2d = jnp.asarray(b2, jnp.float32).reshape(1, o_dim)

    # ---- pick the token tile --------------------------------------------------
    if m <= 8:
        tm = m                           # single block equal to the full dim: legal
    else:
        tm = min(tile_m, _round_up(m, 8))
        # Shrink until the per-step footprint fits the VMEM budget (v7x: 64 MiB phys).
        while (tm > 8 and
               _vmem_bytes(tm, f, h_dim, o_dim, x.dtype, w1.dtype, x.dtype)
               > vmem_budget_bytes):
            tm = max(8, _round_up(tm // 2, 8))
        # Ensure >= 2 grid steps so the "parallel" axis can split across TensorCores.
        if pl.cdiv(m, tm) < 2:
            tm = max(8, _round_up(pl.cdiv(m, 2), 8))

    grid = (pl.cdiv(m, tm),)

    est = _vmem_bytes(tm, f, h_dim, o_dim, x.dtype, w1.dtype, x.dtype)
    vmem_limit = int(min(max(2 * est, est + (8 << 20)), 48 << 20))   # v7x-safe cap

    # Weights are grid-invariant; if they are large, do not double-buffer them.
    w_bytes = (f * h_dim + h_dim * o_dim) * jnp.dtype(w1.dtype).itemsize
    w_pipeline = pl.Buffered(1) if w_bytes > (8 << 20) else None

    def _resident(shape):
        if w_pipeline is None:
            return pl.BlockSpec(shape, lambda i: (0, 0))
        return pl.BlockSpec(shape, lambda i: (0, 0), pipeline_mode=w_pipeline)

    kernel = functools.partial(_mlp_kernel, compute_dtype=compute_dtype)

    out = pl.pallas_call(
        kernel,
        out_shape=jax.ShapeDtypeStruct((m, o_dim), x.dtype),
        grid_spec=pltpu.PrefetchScalarGridSpec(
            num_scalar_prefetch=0,
            grid=grid,
            in_specs=[
                pl.BlockSpec((tm, f), lambda i: (i, 0)),   # x tile follows the grid
                _resident((f, h_dim)),                     # w1 resident in VMEM
                _resident((1, h_dim)),                     # b1
                _resident((h_dim, o_dim)),                 # w2
                _resident((1, o_dim)),                     # b2
            ],
            out_specs=pl.BlockSpec((tm, o_dim), lambda i: (i, 0)),
        ),
        compiler_params=pltpu.CompilerParams(
            dimension_semantics=("parallel",),             # data-parallel over tokens
            vmem_limit_bytes=vmem_limit,
        ),
    )(x2d, w1, b1_2d, w2, b2_2d)

    return out.reshape(b, n, o_dim)


if __name__ == "__main__":
    # Small shapes consistent with the forward: (b, n, input_dim)
    B, N = 2, 8
    input_dim, hidden_dim, output_dim = 16, 32, 16

    key = jax.random.PRNGKey(0)
    kx, k1, k2, k3, k4 = jax.random.split(key, 5)

    x = jax.random.normal(kx, (B, N, input_dim), dtype=jnp.float32)

    # nn.Linear computes y = x @ W.T + b; we pass the already-transposed (in, out) weights.
    w1 = jax.random.normal(k1, (input_dim, hidden_dim), dtype=jnp.float32) * 0.1
    b1 = jax.random.normal(k2, (1, hidden_dim), dtype=jnp.float32) * 0.1
    w2 = jax.random.normal(k3, (hidden_dim, output_dim), dtype=jnp.float32) * 0.1
    b2 = jax.random.normal(k4, (1, output_dim), dtype=jnp.float32) * 0.1

    out = mlp_forward(x, w1, b1, w2, b2)
    jax.block_until_ready(out)
    assert out.shape == (B, N, output_dim)
    assert out.dtype == x.dtype

    # Pure-JAX reference (module semantics: f32 throughout).
    x2d_ref = x.reshape(-1, input_dim)
    ref = (jnp.maximum(x2d_ref @ w1 + b1, 0.0) @ w2 + b2).reshape(B, N, output_dim)
    max_err = float(jnp.max(jnp.abs(out - ref)))
    assert jnp.allclose(out, ref, atol=2e-2, rtol=2e-2), max_err

    print("KERNEL_OK")
</pallas_src>

<mosaic_0001>
module attributes {stable_mosaic.version = 11 : i64} {
  func.func @_mlp_kernel(%arg0: i32, %arg1: memref<8x16xf32, #tpu.memory_space<vmem>>, %arg2: memref<16x32xf32, #tpu.memory_space<vmem>>, %arg3: memref<1x32xf32, #tpu.memory_space<vmem>>, %arg4: memref<32x16xf32, #tpu.memory_space<vmem>>, %arg5: memref<1x16xf32, #tpu.memory_space<vmem>>, %arg6: memref<8x16xf32, #tpu.memory_space<vmem>>) attributes {dimension_semantics = [#tpu.dimension_semantics<parallel>], iteration_bounds = array<i64: 2>, scalar_prefetch = 0 : i64, scratch_operands = 0 : i64, tpu.core_type = #tpu.core_type<tc>, window_params = [{transform_indices = @transform_0, window_bounds = array<i64: 8, 16>}, {pipeline_mode = #tpu.pipeline_mode<synchronous>, transform_indices = @transform_1, window_bounds = array<i64: 16, 32>}, {pipeline_mode = #tpu.pipeline_mode<synchronous>, transform_indices = @transform_2, window_bounds = array<i64: 1, 32>}, {pipeline_mode = #tpu.pipeline_mode<synchronous>, transform_indices = @transform_3, window_bounds = array<i64: 32, 16>}, {pipeline_mode = #tpu.pipeline_mode<synchronous>, transform_indices = @transform_4, window_bounds = array<i64: 1, 16>}, {transform_indices = @transform_5, window_bounds = array<i64: 8, 16>}]} {
    %c0 = arith.constant 0 : index
    %c0_0 = arith.constant 0 : index
    %0 = vector.load %arg1[%c0, %c0_0] : memref<8x16xf32, #tpu.memory_space<vmem>>, vector<8x16xf32>
    %c0_1 = arith.constant 0 : index
    %c0_2 = arith.constant 0 : index
    %1 = vector.load %arg2[%c0_1, %c0_2] : memref<16x32xf32, #tpu.memory_space<vmem>>, vector<16x32xf32>
    %cst = arith.constant dense<0.000000e+00> : vector<8x32xf32>
    %2 = tpu.matmul %0, %1, %cst {dimension_numbers = #tpu.dot_dimension_numbers<[1], [0], [0], [1], [0, 0, 1, 1], [], []>} : vector<8x16xf32>, vector<16x32xf32>, vector<8x32xf32> -> vector<8x32xf32>
    %c0_3 = arith.constant 0 : index
    %c0_4 = arith.constant 0 : index
    %3 = vector.load %arg3[%c0_3, %c0_4] : memref<1x32xf32, #tpu.memory_space<vmem>>, vector<1x32xf32>
    %4 = vector.broadcast %3 : vector<1x32xf32> to vector<8x32xf32>
    %5 = arith.addf %2, %4 : vector<8x32xf32>
    %cst_5 = arith.constant 0.000000e+00 : f32
    %6 = vector.broadcast %cst_5 : f32 to vector<8x32xf32>
    %7 = arith.maximumf %5, %6 : vector<8x32xf32>
    %c0_6 = arith.constant 0 : index
    %c0_7 = arith.constant 0 : index
    %8 = vector.load %arg4[%c0_6, %c0_7] : memref<32x16xf32, #tpu.memory_space<vmem>>, vector<32x16xf32>
    %cst_8 = arith.constant dense<0.000000e+00> : vector<8x16xf32>
    %9 = tpu.matmul %7, %8, %cst_8 {dimension_numbers = #tpu.dot_dimension_numbers<[1], [0], [0], [1], [0, 0, 1, 1], [], []>} : vector<8x32xf32>, vector<32x16xf32>, vector<8x16xf32> -> vector<8x16xf32>
    %c0_9 = arith.constant 0 : index
    %c0_10 = arith.constant 0 : index
    %10 = vector.load %arg5[%c0_9, %c0_10] : memref<1x16xf32, #tpu.memory_space<vmem>>, vector<1x16xf32>
    %11 = vector.broadcast %10 : vector<1x16xf32> to vector<8x16xf32>
    %12 = arith.addf %9, %11 : vector<8x16xf32>
    %c0_11 = arith.constant 0 : index
    %c0_12 = arith.constant 0 : index
    %13 = vector.load %arg6[%c0_11, %c0_12] : memref<8x16xf32, #tpu.memory_space<vmem>>, vector<8x16xf32>
    tpu.vector_store %arg6[%c0_11, %c0_12], %12 {strides = array<i32>} : memref<8x16xf32, #tpu.memory_space<vmem>>, vector<8x16xf32>,
    return
  }
  func.func @transform_0(%arg0: i32) -> (i32, i32) {
    %c0_i32 = arith.constant 0 : i32
    %c0_i32_0 = arith.constant 0 : i32
    return %arg0, %c0_i32 : i32, i32
  }
  func.func @transform_1(%arg0: i32) -> (i32, i32) {
    %c0_i32 = arith.constant 0 : i32
    %c0_i32_0 = arith.constant 0 : i32
    %c0_i32_1 = arith.constant 0 : i32
    return %c0_i32, %c0_i32_0 : i32, i32
  }
  func.func @transform_2(%arg0: i32) -> (i32, i32) {
    %c0_i32 = arith.constant 0 : i32
    %c0_i32_0 = arith.constant 0 : i32
    %c0_i32_1 = arith.constant 0 : i32
    return %c0_i32, %c0_i32_0 : i32, i32
  }
  func.func @transform_3(%arg0: i32) -> (i32, i32) {
    %c0_i32 = arith.constant 0 : i32
    %c0_i32_0 = arith.constant 0 : i32
    %c0_i32_1 = arith.constant 0 : i32
    return %c0_i32, %c0_i32_0 : i32, i32
  }
  func.func @transform_4(%arg0: i32) -> (i32, i32) {
    %c0_i32 = arith.constant 0 : i32
    %c0_i32_0 = arith.constant 0 : i32
    %c0_i32_1 = arith.constant 0 : i32
    return %c0_i32, %c0_i32_0 : i32, i32
  }
  func.func @transform_5(%arg0: i32) -> (i32, i32) {
    %c0_i32 = arith.constant 0 : i32
    %c0_i32_0 = arith.constant 0 : i32
    return %arg0, %c0_i32 : i32, i32
  }
}

</mosaic_0001>

<bundles_post_ra>
// kernel: tpu_custom_call.1
= control target key start
LH: loop header
LB: loop body
LE: loop exit
PB: predicated region body
PF: predicated region fallthrough
CT: control target
= control target key end

     0   :  { %10 = vsyncpa [#allocation3], 0  ;;  %s779_s0 = inlined_call_operand.vmem [shape: f32[16,16], index: 0, kind: input, shape index: {}]   ;;  %s780_s1 = inlined_call_operand.vmem [shape: f32[16,32], index: 1, kind: input, shape index: {}]   ;;  %s781_s2 = inlined_call_operand.vmem [shape: f32[1,32], index: 2, kind: input, shape index: {}]   ;;  %s782_s3 = inlined_call_operand.vmem [shape: f32[32,16], index: 3, kind: input, shape index: {}]   ;;  %s783_s4 = inlined_call_operand.vmem [shape: f32[1,16], index: 4, kind: input, shape index: {}]   ;;  %s784_s5 = inlined_call_operand.hbm [shape: f32[16,16], index: 5, kind: output, shape index: {}]  }
   0x1   :  { %12 = vsyncpa [#allocation3 + $0x1], 0  ;;  %s653_s18 = smov 0   ;;  %s655_s19 = smov 0  }
   0x2   :  { %s657_s20 = smov 0   ;;  %s659_s21 = smov 0  }
   0x3 LB: > { %s674_s22 = sadd.s32 4294967295, %s617_s21   ;;  %s464_s23 = sadd.s32 4294967294, %s617_s21   ;;  %s617_s21 = sphi %s659_s21, %s790_s21   ;;  %s613_s20 = sphi %s657_s20, %s789_s20   ;;  %s609_s19 = sphi %s655_s19, %s788_s19   ;;  %s605_s18 = sphi %s653_s18, %s787_s18  }
   0x4   : > { %s678_s24 = sadd.s32 1, %s617_s21   ;;  %s135_s25 = sadd.s32 1, %s613_s20 }
   0x5   : > { %s132_s26 = ssub.s32 %s617_s21, %s678_s24  ;;  %p145_p0 = scmp.ne.s32.totalorder %s613_s20, %s609_s19 }
   0x6   : > { %p133_p1 = scmp.eq.s32.totalorder %s132_s26, 0  ;;  %p146_p2 = scmp.eq.s32.totalorder %s674_s22, 1 }
   0x7   : > { %p151_p3 = scmp.ne.s32.totalorder %s609_s19, %s605_s18  ;;  %p152_p4 = scmp.eq.s32.totalorder %s464_s23, 1 }
   0x8   : > { %s689_s27 = scalar_select %p133_p1, %s613_s20, %s135_s25  }
   0x9   : > { %p691_p5 = por %p146_p2, %p145_p0  ;;  %p695_p6 = por %p152_p4, %p151_p3 }
   0xa   : > { %p467_p7 = scmp.ge.s32.totalorder %s617_s21, 1  ;;  %p189_p8 = scmp.lt.s32.totalorder %s617_s21, 3 }
   0xc   : > { %p190_p9 = pnand %p467_p7, %p189_p8 }
   0xd   : > { %v221_v0 = vld [vmem:[%s780_s1] sm:$0xff] (!%p190_p9)  ;;  %v222_v1 = vld [vmem:[%s780_s1 + $0x8] sm:$0xff] (!%p190_p9)  ;;  %p216_p10 = scmp.lt.s32.totalorder (!%p190_p9), %s674_s22, 1  ;;  %v619_v2 = vmov (!%p190_p9), 0.0|0.0   ;;  %vm620_vm0 = vmmov (!%p190_p9), 0   ;;  %v621_v4 = vmov (!%p190_p9), 0.0  }
   0xe   : > { %193 = sbr.rel (%p190_p9) target bundleno = 470 (0x1d6), region = 40  ;;  %504 = vmatprep.subr.bf16.mxu0 (!%p190_p9), %v619_v2  ;;  %v505_v3 = vpack.c.bf16 (!%p190_p9), %v222_v1, %v221_v0  ;;  %490 = vmatprep.mubr.msk.f32.mxu0 (!%p190_p9), %vm620_vm0, %v621_v4  ;;  %v305_v5 = vld [vmem:[%s782_s3] sm:$0xff] (!%p190_p9)  ;;  %v306_v6 = vld [vmem:[%s782_s3 + $0x8] sm:$0xff] (!%p190_p9)  ;;  %vm230_vm1 = vcmask (!%p190_p9), 130048   ;;  %v307_v9 = vld [vmem:[%s782_s3 + $0x10] sm:$0xff] (!%p190_p9)  ;;  %vm316_vm2 = vcmask (!%p190_p9), 261120  }
   0xf   : > { %507 = vmatprep.subr.bf16.mxu1 (!%p190_p9), %v619_v2  ;;  %v508_v7 = vpack.c.bf16 (!%p190_p9), %v306_v6, %v305_v5  ;;  %501 = vmatprep.mubr.msk.f32.mxu1 (!%p190_p9), %vm620_vm0, %v621_v4  ;;  %v308_v10 = vld [vmem:[%s782_s3 + $0x18] sm:$0xff] (!%p190_p9)  ;;  %v470_v12 = vld [vmem:[%s781_s2] ss:$0 sm:$0xff] (!%p190_p9)  ;;  %s213_s8 = sand.u32 (!%p190_p9), 1, %s609_s19   ;;  %s475_s12 = sshll.u32 (!%p190_p9), %s674_s22, 7 }
  0x10   : > { %506 = vmatpush3.bf16.msra.mxu0 (!%p190_p9), %v505_v3  ;;  %v511_v11 = vpack.c.bf16 (!%p190_p9), %v308_v10, %v307_v9  ;;  %s468_s9 = sshll.u32 (!%p190_p9), %s213_s8, 3  ;;  %v472_v17 = vld [vmem:[%s783_s4] ss:$0 sm:$0xff] (!%p190_p9)  ;;  %s392_s23 = scalar_lea.sflag (!%p190_p9), [#allocation3], %s213_s8 }
  0x11   : > { %509 = vmatpush3.bf16.msra.mxu1 (!%p190_p9), %v508_v7 }
  0x12   : > { %510 = vmatprep.subr.bf16.mxu1 (!%p190_p9), %v619_v2 }
  0x15   : > { %s217_s13 = scalar_select %p216_p10, %s674_s22, 1  ;;  %512 = vmatpush3.bf16.msra.mxu1 %v511_v11 }
  0x16   : > { %s622_s22 = smov [#allocation2]  }
  0x17   : > { %s469_s14 = sshll.u32 %s217_s13, 3  ;;  %s215_s13 = scalar_lea.vmem [#allocation2], %s468_s9 }
  0x18   : > { %s219_s17 = scalar_lea.vmem %s779_s0, %s469_s14  ;;  %s405_s14 = sshll.u32 %s215_s13, 4  ;;  %s738_s14 = int_to_ptr.vmem [resolvable:$true] %s405_s14 }
  0x19   : > { %v220_v8 = vld [vmem:[%s219_s17] sm:$0xff]  ;;  %s736_s17 = scalar_lea.hbm %s784_s5, %s475_s12  ;;  %s555_s25 = scalar_lea.vmem %s738_s14, 128 }
  0x1a   : > { %491 = vmatmul.mubr.msk.f32.vlgmr.msra.gmra.mrb[0].mxu0 %vm230_vm1, %v220_v8  ;;  %p556_p11 = scmp.ne.s32.totalorder %s738_s14, %s555_s25  ;;  %s559_s26 = sshll.u32 %s622_s22, 4  ;;  %s560_s26 = int_to_ptr.vmem [resolvable:$false] %s559_s26 }
  0x1b   : > { %s561_s30 = scalar_lea.vmem %s560_s26, 256  ;;  %p562_p0 = scmp.lt.s32.totalorder %s738_s14, %s560_s26 }
  0x1c   : > { %p557_p12 = pnand %p556_p11, %p691_p5  ;;  %p563_p1 = scmp.lt.s32.totalorder %s561_s30, %s555_s25 }
  0x1e   : > { %p558_p13 = pneg %p557_p12  ;;  %p564_p2 = por %p563_p1, %p562_p0 }
  0x20   : > { %p565_p3 = pnand %p564_p2, %p558_p13 }
  0xed   : > { %v300_v13 = vpop.f32.mrb[0].mxu0 }
  0xee   : > { %v301_v14 = vadd.f32 %v470_v12, %v300_v13  ;;  %v492_v15 = vpop.f32.mrb[1].mxu0 }
  0xf0   : > { %v304_v16 = vmax.f32 %v301_v14, 0.0 }
  0xf2   : > { %502 = vmatmul.mubr.msk.f32.vlgmr.msra.gmra.mrb[0].mxu1 %vm316_vm2, %v304_v16 }
 0x1c5   : > { %v386_v18 = vpop.f32.mrb[0].mxu1 }
 0x1c6   : > { %v387_v19 = vadd.f32 %v472_v17, %v386_v18  ;;  %v503_v20 = vpop.f32.mrb[1].mxu1 }
 0x1c8   : > { %390 = vst.msk [vmem:[%s215_s13] sm:$0xff] %vm230_vm1, %v387_v19 }
 0x1c9   : > { %568 = shalt.err (!%p565_p3)
}
 0x1ca   : > { %s569_s6 = scalar_lea.hbm %s736_s17, 128  ;;  %s573_s9 = scalar_lea.hbm %s784_s5, 256 }
 0x1cb   : > { %p570_p4 = scmp.ne.s32.totalorder %s736_s17, %s569_s6  ;;  %p574_p9 = scmp.lt.u32.totalorder %s736_s17, %s784_s5 }
 0x1cc   : > { %p575_p10 = scmp.lt.u32.totalorder %s573_s9, %s569_s6  ;;  %p577_p12 = scmp.lt.u32.totalorder %s569_s6, %s736_s17 }
 0x1cd   : > { %p571_p7 = pnand %p570_p4, %p691_p5 }
 0x1ce   : > { %p576_p11 = por %p575_p10, %p574_p9 }
 0x1cf   : > { %p572_p8 = pneg %p571_p7 }
 0x1d0   : > { %p578_p13 = por %p577_p12, %p576_p11 }
 0x1d2   : > { %p579_p0 = pnand %p578_p13, %p572_p8 }
 0x1d4   : > { %582 = shalt.err (!%p579_p0)
}
 0x1d5   : > { %513 = dma.vmem_to_hbm [thread:$0]  (%p691_p5), %s738_s14, 128, %s736_s17, %s392_s23  }
 0x1d6 PF: > { %p519_p1 = scmp.ge.s32.totalorder %s617_s21, 2  ;;  %s417_s12 = sand.u32 1, %s605_s18  }
 0x1d7   : > { %s418_s13 = scalar_lea.sflag [#allocation3], %s417_s12 }
 0x1d8   : > { %p516_p2 = pnand %p519_p1, %p695_p6 }
 0x1da   : > { %600 = dma.done.wait (!%p516_p2), %s418_s13, 128  }
 0x1db   : > { %602 = vsyncadd (!%p516_p2), %s418_s13, 4294967168  ;;  %p15_p3 = scmp.ge.s32.totalorder %s678_s24, 4   ;;  %s787_s18 = smov %s609_s19 }
 0x1dc   : > { %s788_s19 = smov %s613_s20  ;;  %s789_s20 = smov %s689_s27 }
 0x1dd   : > { %s790_s21 = smov %s678_s24  ;;  %17 = sbr.rel (!%p15_p3) target bundleno = 3 (0x3), region = 75 }
 0x1e4   :  { %423 = vsyncpa [#allocation3], 1 }
 0x1e5   :  { %425 = vsyncpa [#allocation3 + $0x1], 1 }

</bundles_post_ra>
